<compile_context>
chip_gen: v7x
topology: tpu7x:2x2x1
jax: 0.10.0
libtpu: 0.0.40
codegen_flags: <defaults>
</compile_context>

<pallas_src>
import functools

import jax
import jax.numpy as jnp
from jax import lax
from jax.experimental import pallas as pl
from jax.experimental.pallas import tpu as pltpu


def _round_up(x, m):
    return ((x + m - 1) // m) * m


@functools.lru_cache(maxsize=None)
def _vmem_limit_bytes():
    """Generation-aware scoped-VMEM limit (~100 MiB on 128 MiB parts, ~51 MiB on v7x)."""
    cap = 128 * 1024 * 1024
    try:
        info = pltpu.get_tpu_info()
        cap = int(getattr(info, "vmem_capacity_bytes", cap) or cap)
    except Exception:
        pass
    return max(16 << 20, min(int(cap * 0.8), cap - (12 << 20)))


def _select_tile_s(S, B, D, K_pad, k_chunk, out_bytes, vmem_limit):
    """Spatial tile (multiple of 128) sized from the actual VMEM buffer math."""
    resident = (D + 1) * K_pad * 4                 # single-buffered codebook
    per_col = (2 * D * 4                           # x block, double-buffered (f32)
               + 2 * D * out_bytes                 # q block, double-buffered
               + (D + 1) * (4 + 2)                 # x_aug f32 + matmul-dtype copy
               + 4 * k_chunk * 4)                  # ~4 live (k_chunk, TS) temporaries
    budget = vmem_limit - resident - (6 << 20)     # compiler / pipeline slack
    tile = budget // per_col if budget > 0 else 128
    tile = min(int(tile), 1 << 16, _round_up(S, 128))
    tile = max(128, (tile // 128) * 128)
    # Keep at least ~4 grid steps when possible so both v7x TensorCores stay busy.
    while tile > 128 and B * pl.cdiv(S, tile) < 4:
        tile = max(128, ((tile // 2) // 128) * 128)
    n_s = pl.cdiv(S, tile)
    return tile, n_s


def _vq_kernel(x_ref, cb_ref, q_ref, sse_ref, *,
               k_chunk, n_k_chunks, matmul_dtype, gather_limbs,
               s_valid, tile_s, mask_pad):
    """Quantize one (D, TS) channels-first tile of latents.

    x_ref:   (1, D, TS)     f32  latents tile (batch b, spatial slice s)
    cb_ref:  (D+1, K_pad)   f32  resident codebook: row 0 = |e|^2, rows 1..D = -2 E^T
    q_ref:   (1, D, TS)          quantized output tile
    sse_ref: (8, 128)       f32  per-tile partial SSE (broadcast; reduced in wrapper)
    """
    x = x_ref[0]                                            # (D, TS) f32
    D, TS = x.shape

    # Augment latents with a leading row of ones so the |e|^2 term comes straight
    # off the MXU:  score[k, n] = |e_k|^2 - 2 e_k . x_n  (|x_n|^2 omitted).
    x_aug = jnp.concatenate([jnp.ones((1, TS), jnp.float32), x], axis=0)  # (D+1, TS)
    x_aug_m = x_aug.astype(matmul_dtype)

    # Pass 1: running min / argmin over codebook chunks (first index wins ties).
    run_min = jnp.full((1, TS), jnp.inf, dtype=jnp.float32)
    run_idx = jnp.zeros((1, TS), dtype=jnp.int32)
    for c in range(n_k_chunks):
        cs, ce = c * k_chunk, (c + 1) * k_chunk
        cb_c = cb_ref[:, cs:ce]                             # (D+1, Kc) f32
        score = lax.dot_general(                            # (Kc, TS) f32
            cb_c.astype(matmul_dtype), x_aug_m,
            dimension_numbers=(((0,), (0,)), ((), ())),
            preferred_element_type=jnp.float32)
        c_min = jnp.min(score, axis=0, keepdims=True)       # (1, TS)
        iota_k = lax.broadcasted_iota(jnp.int32, (k_chunk, TS), 0)
        c_idx = jnp.min(jnp.where(score <= c_min, iota_k, k_chunk),
                        axis=0, keepdims=True)              # (1, TS) chunk-local
        better = c_min < run_min            # strict '<' -> earlier chunk wins ties
        run_idx = jnp.where(better, c_idx + c * k_chunk, run_idx)
        run_min = jnp.minimum(run_min, c_min)

    # Pass 2: gather the winning codebook rows as one-hot matmuls.  cb rows 1..D
    # hold -2 E^T, so scale by -0.5 (exact power of two) at the end.
    q_acc = jnp.zeros((D, TS), dtype=jnp.float32)
    for c in range(n_k_chunks):
        cs, ce = c * k_chunk, (c + 1) * k_chunk
        neg2e = cb_ref[1:, cs:ce]                           # (D, Kc) f32
        iota_k = lax.broadcasted_iota(jnp.int32, (k_chunk, TS), 0)
        one_hot = (iota_k == (run_idx - c * k_chunk)).astype(jnp.float32)
        if gather_limbs <= 0:
            q_acc = q_acc + jnp.dot(neg2e, one_hot,
                                    preferred_element_type=jnp.float32)
        else:
            # bf16-limb decomposition: one-hot (0/1) is exact in bf16, so each
            # output element is the limb sum of a single codebook value.
            oh = one_hot.astype(jnp.bfloat16)
            rem = neg2e
            for _ in range(gather_limbs):
                limb = rem.astype(jnp.bfloat16)
                q_acc = q_acc + jnp.dot(limb, oh,
                                        preferred_element_type=jnp.float32)
                rem = rem - limb.astype(jnp.float32)
    q = q_acc * jnp.float32(-0.5)
    q_ref[0] = q.astype(q_ref.dtype)

    # Per-tile partial SSE (padded spatial columns masked out); wrapper reduces.
    diff = q - x
    if mask_pad:
        col = (pl.program_id(1) * tile_s
               + lax.broadcasted_iota(jnp.int32, (1, TS), 1))
        diff = diff * (col < s_valid).astype(jnp.float32)
    partial = jnp.sum(diff * diff)
    sse_ref[...] = jnp.broadcast_to(partial, sse_ref.shape)


def _vq_flat(x_bds, cb_aug, *, k_chunk, n_k_chunks, matmul_dtype,
             gather_limbs, out_dtype):
    """Quantize channels-first latents [B, D, S].  Returns (q [B,D,S], sse scalar)."""
    B, D, S = x_bds.shape
    Dp1, K_pad = cb_aug.shape
    assert Dp1 == D + 1

    vmem_limit = _vmem_limit_bytes()
    out_bytes = jnp.dtype(out_dtype).itemsize
    tile_s, n_s = _select_tile_s(S, B, D, K_pad, k_chunk, out_bytes, vmem_limit)
    S_pad = n_s * tile_s
    x_pad = jnp.pad(x_bds, ((0, 0), (0, 0), (0, S_pad - S))) if S_pad != S else x_bds
    n_tiles = B * n_s

    kernel = functools.partial(
        _vq_kernel, k_chunk=k_chunk, n_k_chunks=n_k_chunks,
        matmul_dtype=matmul_dtype, gather_limbs=gather_limbs,
        s_valid=S, tile_s=tile_s, mask_pad=(S_pad != S))

    def build(single_buffer_codebook):
        cb_kwargs = {}
        if single_buffer_codebook:
            # Constant block index -> fetched once; one VMEM buffer is enough.
            cb_kwargs["pipeline_mode"] = pl.Buffered(1)
        return pl.pallas_call(
            kernel,
            out_shape=(
                jax.ShapeDtypeStruct((B, D, S_pad), out_dtype),
                jax.ShapeDtypeStruct((8 * n_tiles, 128), jnp.float32),
            ),
            grid_spec=pltpu.PrefetchScalarGridSpec(
                num_scalar_prefetch=0,
                grid=(B, n_s),
                in_specs=[
                    pl.BlockSpec((1, D, tile_s), lambda b, s: (b, 0, s)),
                    pl.BlockSpec((D + 1, K_pad), lambda b, s: (0, 0), **cb_kwargs),
                ],
                out_specs=[
                    pl.BlockSpec((1, D, tile_s), lambda b, s: (b, 0, s)),
                    pl.BlockSpec((8, 128), lambda b, s: (b * n_s + s, 0)),
                ],
            ),
            compiler_params=pltpu.CompilerParams(
                dimension_semantics=("parallel", "parallel"),
                vmem_limit_bytes=int(vmem_limit),
            ),
        )

    try:
        q_pad, sse_parts = build(True)(x_pad, cb_aug)
    except Exception:
        # pl.Buffered(1) is a pure VMEM-footprint optimization; fall back to the
        # default double-buffered codebook if this build rejects it.
        q_pad, sse_parts = build(False)(x_pad, cb_aug)

    sse = jnp.sum(sse_parts) * (1.0 / (8.0 * 128.0))
    q = q_pad[..., :S] if S_pad != S else q_pad
    return q, sse


class VectorQuantizerPallas:
    """JAX/Pallas forward-pass equivalent of the PyTorch VectorQuantizer."""

    def __init__(self, num_embeddings, embedding_dim, beta=0.25, key=None,
                 matmul_dtype=jnp.bfloat16, gather_limbs=3,
                 out_dtype=jnp.float32, k_chunk_max=1024):
        self.K = int(num_embeddings)
        self.D = int(embedding_dim)
        self.beta = beta
        self.matmul_dtype = matmul_dtype        # jnp.float32 -> exact (PyTorch) argmin
        self.gather_limbs = int(gather_limbs)   # 0 -> exact f32 gather matmul
        self.out_dtype = out_dtype              # bf16 halves q writeback traffic
        if key is None:
            key = jax.random.PRNGKey(0)
        # nn.Embedding weight, uniform(-1/K, 1/K).
        self.embedding_weight = jax.random.uniform(
            key, (self.K, self.D), dtype=jnp.float32,
            minval=-1.0 / self.K, maxval=1.0 / self.K)

        # Codebook chunking along K so in-kernel (K, tile_s) temporaries are
        # bounded (required to fit v7x's 64 MiB VMEM at large K).
        if self.K > k_chunk_max:
            self.k_chunk = int(k_chunk_max)                  # multiple of 128
            self.K_pad = _round_up(self.K, self.k_chunk)
        else:
            self.k_chunk = self.K
            self.K_pad = self.K
        self.n_k_chunks = self.K_pad // self.k_chunk

        # Single resident codebook tensor: row 0 = |e|^2, rows 1..D = -2 E^T.
        # Padded codes get a huge |e|^2 so they can never win the argmin.
        e2 = jnp.sum(self.embedding_weight ** 2, axis=1, keepdims=True)    # (K, 1)
        cb = jnp.concatenate([e2.T, -2.0 * self.embedding_weight.T], 0)    # (D+1, K)
        if self.K_pad != self.K:
            pad = jnp.zeros((self.D + 1, self.K_pad - self.K), jnp.float32)
            pad = pad.at[0, :].set(1e6)
            cb = jnp.concatenate([cb, pad], axis=1)
        self.codebook_aug = cb

    def __call__(self, latents):
        lat = jnp.asarray(latents)
        orig_shape = lat.shape
        if lat.ndim == 3:
            B, D, S = lat.shape
            x_bds = lat                                      # [B, D, L]
        else:
            B, D, H, W = lat.shape
            x_bds = lat.reshape(B, D, H * W)                 # free reshape, no transpose
        assert D == self.D, "channel dim must equal embedding_dim"

        q_bds, sse = _vq_flat(
            x_bds.astype(jnp.float32), self.codebook_aug,
            k_chunk=self.k_chunk, n_k_chunks=self.n_k_chunks,
            matmul_dtype=self.matmul_dtype, gather_limbs=self.gather_limbs,
            out_dtype=self.out_dtype)

        mse = sse / x_bds.size
        vq_loss = mse * self.beta + mse          # commitment*beta + embedding loss

        # Straight-through estimator: forward value of
        # latents + (quantized - latents).detach() equals quantized.
        # TODO(synk): backward (stop_gradient / detach) semantics need a custom_vjp;
        # only the forward pass is implemented here.
        quantized = q_bds.reshape(orig_shape)
        return quantized, vq_loss


if __name__ == "__main__":
    key = jax.random.PRNGKey(0)
    k_x4, k_x3, k_e = jax.random.split(key, 3)

    K, D, beta = 8, 4, 0.25
    x4 = jax.random.normal(k_x4, (2, D, 16, 16), dtype=jnp.float32)
    x3 = jax.random.normal(k_x3, (2, D, 24), dtype=jnp.float32)

    def check(vq, x, strict_gap, loss_atol):
        q, loss = vq(x)
        q = jax.block_until_ready(q)
        loss = float(jax.block_until_ready(loss))
        assert q.shape == x.shape and q.dtype == x.dtype
        E = vq.embedding_weight
        perm = (0, 2, 1) if x.ndim == 3 else (0, 2, 3, 1)
        flat_x = jnp.transpose(x, perm).reshape(-1, D).astype(jnp.float32)
        flat_q = jnp.transpose(q, perm).reshape(-1, D).astype(jnp.float32)
        # True (PyTorch-semantics) f32 distances.
        dist = (jnp.sum(flat_x ** 2, 1, keepdims=True)
                + jnp.sum(E ** 2, 1)[None, :]
                - 2.0 * jnp.dot(flat_x, E.T, precision=lax.Precision.HIGHEST))
        idx = jnp.argmin(dist, axis=1)
        q_ref = E[idx]
        srt = jnp.sort(dist, axis=1)
        gap = srt[:, 1] - srt[:, 0]
        # 1) Every quantized vector must be (numerically) a codebook row.
        row_err = jnp.min(jnp.max(jnp.abs(flat_q[:, None, :] - E[None, :, :]),
                                  axis=-1), axis=-1)
        assert float(jnp.max(row_err)) < 1e-5, "output is not a codebook row"
        # 2) Away from near-ties the selected code must match the f32 reference.
        err = jnp.max(jnp.abs(flat_q - q_ref), axis=-1)
        err = jnp.where(gap > strict_gap, err, 0.0)
        assert float(jnp.max(err)) < 1e-5, "argmin mismatch away from ties"
        # 3) Loss.
        mse_ref = jnp.mean((q_ref - flat_x) ** 2)
        loss_ref = float(mse_ref * beta + mse_ref)
        assert abs(loss - loss_ref) < loss_atol, "vq_loss mismatch"

    # Exact mode: f32 distance score + f32 gather -> true PyTorch semantics.
    vq_exact = VectorQuantizerPallas(K, D, beta, key=k_e,
                                     matmul_dtype=jnp.float32, gather_limbs=0)
    check(vq_exact, x4, strict_gap=1e-3, loss_atol=1e-4)   # 4-D NCHW
    check(vq_exact, x3, strict_gap=1e-3, loss_atol=1e-4)   # 3-D NCL (S padded to 128)

    # Default fast mode: bf16 MXU distance + 3-limb bf16 gather.  Near-tied codes
    # (gap < ~0.1) may legitimately resolve differently from f32.
    vq_fast = VectorQuantizerPallas(K, D, beta, key=k_e)
    check(vq_fast, x4, strict_gap=1e-1, loss_atol=2e-3)

    print("KERNEL_OK")
</pallas_src>

<mosaic_0001>
module attributes {stable_mosaic.version = 11 : i64} {
  func.func @_vq_kernel(%arg0: i32, %arg1: i32, %arg2: memref<1x4x128xf32, #tpu.memory_space<vmem>>, %arg3: memref<5x8xf32, #tpu.memory_space<vmem>>, %arg4: memref<1x4x128xf32, #tpu.memory_space<vmem>>, %arg5: memref<8x128xf32, #tpu.memory_space<vmem>>) attributes {dimension_semantics = [#tpu.dimension_semantics<parallel>, #tpu.dimension_semantics<parallel>], iteration_bounds = array<i64: 2, 2>, scalar_prefetch = 0 : i64, scratch_operands = 0 : i64, tpu.core_type = #tpu.core_type<tc>, window_params = [{transform_indices = @transform_0, window_bounds = array<i64: 1, 4, 128>}, {pipeline_mode = #tpu.pipeline_mode<synchronous>, transform_indices = @transform_1, window_bounds = array<i64: 5, 8>}, {transform_indices = @transform_2, window_bounds = array<i64: 1, 4, 128>}, {transform_indices = @transform_3, window_bounds = array<i64: 8, 128>}]} {
    %c0 = arith.constant 0 : index
    %c0_0 = arith.constant 0 : index
    %c0_1 = arith.constant 0 : index
    %0 = vector.load %arg2[%c0, %c0_0, %c0_1] : memref<1x4x128xf32, #tpu.memory_space<vmem>>, vector<1x4x128xf32>
    %1 = vector.shape_cast %0 : vector<1x4x128xf32> to vector<4x128xf32>
    %cst = arith.constant 1.000000e+00 : f32
    %2 = vector.broadcast %cst : f32 to vector<1x128xf32>
    %3 = tpu.concatenate %2, %1 in 0 : vector<1x128xf32>, vector<4x128xf32> -> vector<5x128xf32>
    %cst_2 = arith.constant 0x7F800000 : f32
    %4 = vector.broadcast %cst_2 : f32 to vector<1x128xf32>
    %c0_i32 = arith.constant 0 : i32
    %5 = vector.broadcast %c0_i32 : i32 to vector<1x128xi32>
    %c0_3 = arith.constant 0 : index
    %c0_4 = arith.constant 0 : index
    %6 = vector.load %arg3[%c0_3, %c0_4] : memref<5x8xf32, #tpu.memory_space<vmem>>, vector<5x8xf32>
    %cst_5 = arith.constant dense<0.000000e+00> : vector<8x128xf32>
    %7 = tpu.matmul %6, %3, %cst_5 {dimension_numbers = #tpu.dot_dimension_numbers<[0], [0], [1], [1], [0, 1, 1, 1], [], []>} : vector<5x8xf32>, vector<5x128xf32>, vector<8x128xf32> -> vector<8x128xf32>
    %cst_6 = arith.constant dense<0x7F800000> : vector<128xf32>
    %8 = vector.multi_reduction <minimumf>, %7, %cst_6 [0] : vector<8x128xf32> to vector<128xf32>
    %9 = vector.shape_cast %8 : vector<128xf32> to vector<1x128xf32>
    %10 = tpu.iota {dimensions = array<i32: 0>} : vector<8x128xi32>
    %11 = vector.broadcast %9 : vector<1x128xf32> to vector<8x128xf32>
    %12 = arith.cmpf ole, %7, %11 : vector<8x128xf32>
    %c8_i32 = arith.constant 8 : i32
    %13 = vector.broadcast %c8_i32 : i32 to vector<8x128xi32>
    %14 = arith.select %12, %10, %13 : vector<8x128xi1>, vector<8x128xi32>
    %cst_7 = arith.constant dense<2147483647> : vector<128xi32>
    %15 = vector.multi_reduction <minsi>, %14, %cst_7 [0] : vector<8x128xi32> to vector<128xi32>
    %16 = vector.shape_cast %15 : vector<128xi32> to vector<1x128xi32>
    %17 = arith.cmpf olt, %9, %4 : vector<1x128xf32>
    %c0_i32_8 = arith.constant 0 : i32
    %18 = vector.broadcast %c0_i32_8 : i32 to vector<1x128xi32>
    %19 = arith.addi %16, %18 : vector<1x128xi32>
    %20 = arith.select %17, %19, %5 : vector<1x128xi1>, vector<1x128xi32>
    %cst_9 = arith.constant 0.000000e+00 : f32
    %21 = vector.broadcast %cst_9 : f32 to vector<4x128xf32>
    %c1 = arith.constant 1 : index
    %c0_10 = arith.constant 0 : index
    %22 = vector.load %arg3[%c1, %c0_10] : memref<5x8xf32, #tpu.memory_space<vmem>>, vector<4x8xf32>
    %23 = tpu.iota {dimensions = array<i32: 0>} : vector<8x128xi32>
    %c0_i32_11 = arith.constant 0 : i32
    %24 = vector.broadcast %c0_i32_11 : i32 to vector<1x128xi32>
    %25 = arith.subi %20, %24 : vector<1x128xi32>
    %26 = vector.broadcast %25 : vector<1x128xi32> to vector<8x128xi32>
    %27 = arith.cmpi eq, %23, %26 : vector<8x128xi32>
    %28 = arith.extui %27 : vector<8x128xi1> to vector<8x128xi32>
    %29 = arith.sitofp %28 : vector<8x128xi32> to vector<8x128xf32>
    %cst_12 = arith.constant dense<0.000000e+00> : vector<4x128xf32>
    %30 = tpu.matmul %22, %29, %cst_12 {dimension_numbers = #tpu.dot_dimension_numbers<[1], [0], [0], [1], [0, 0, 1, 1], [], []>} : vector<4x8xf32>, vector<8x128xf32>, vector<4x128xf32> -> vector<4x128xf32>
    %31 = arith.addf %21, %30 : vector<4x128xf32>
    %cst_13 = arith.constant -5.000000e-01 : f32
    %32 = vector.broadcast %cst_13 : f32 to vector<4x128xf32>
    %33 = arith.mulf %31, %32 : vector<4x128xf32>
    %c0_14 = arith.constant 0 : index
    %c0_15 = arith.constant 0 : index
    %c0_16 = arith.constant 0 : index
    %34 = vector.load %arg4[%c0_14, %c0_15, %c0_16] : memref<1x4x128xf32, #tpu.memory_space<vmem>>, vector<1x4x128xf32>
    %35 = vector.shape_cast %34 : vector<1x4x128xf32> to vector<4x128xf32>
    %36 = vector.shape_cast %33 : vector<4x128xf32> to vector<1x4x128xf32>
    tpu.vector_store %arg4[%c0_14, %c0_15, %c0_16], %36 {strides = array<i32>} : memref<1x4x128xf32, #tpu.memory_space<vmem>>, vector<1x4x128xf32>,
    %37 = arith.subf %33, %1 : vector<4x128xf32>
    %38 = arith.mulf %37, %37 : vector<4x128xf32>
    %39 = vector.shape_cast %38 : vector<4x128xf32> to vector<1x4x128xf32>
    %cst_17 = arith.constant dense<0.000000e+00> : vector<1xf32>
    %40 = vector.multi_reduction <add>, %39, %cst_17 [1, 2] : vector<1x4x128xf32> to vector<1xf32>
    %41 = vector.shape_cast %40 : vector<1xf32> to vector<1x1x1xf32>
    %42 = vector.extract %41[0, 0, 0] : f32 from vector<1x1x1xf32>
    %43 = vector.broadcast %42 : f32 to vector<8x128xf32>
    %c0_18 = arith.constant 0 : index
    %c0_19 = arith.constant 0 : index
    %44 = vector.load %arg5[%c0_18, %c0_19] : memref<8x128xf32, #tpu.memory_space<vmem>>, vector<8x128xf32>
    tpu.vector_store %arg5[%c0_18, %c0_19], %43 {strides = array<i32>} : memref<8x128xf32, #tpu.memory_space<vmem>>, vector<8x128xf32>,
    return
  }
  func.func @transform_0(%arg0: i32, %arg1: i32) -> (i32, i32, i32) {
    %c0_i32 = arith.constant 0 : i32
    %c0_i32_0 = arith.constant 0 : i32
    return %arg0, %c0_i32, %arg1 : i32, i32, i32
  }
  func.func @transform_1(%arg0: i32, %arg1: i32) -> (i32, i32) {
    %c0_i32 = arith.constant 0 : i32
    %c0_i32_0 = arith.constant 0 : i32
    %c0_i32_1 = arith.constant 0 : i32
    return %c0_i32, %c0_i32_0 : i32, i32
  }
  func.func @transform_2(%arg0: i32, %arg1: i32) -> (i32, i32, i32) {
    %c0_i32 = arith.constant 0 : i32
    %c0_i32_0 = arith.constant 0 : i32
    return %arg0, %c0_i32, %arg1 : i32, i32, i32
  }
  func.func @transform_3(%arg0: i32, %arg1: i32) -> (i32, i32) {
    %c2_i32 = arith.constant 2 : i32
    %0 = arith.muli %arg0, %c2_i32 : i32
    %1 = arith.addi %0, %arg1 : i32
    %c0_i32 = arith.constant 0 : i32
    %c0_i32_0 = arith.constant 0 : i32
    return %1, %c0_i32 : i32, i32
  }
}

module attributes {stable_mosaic.version = 11 : i64} {
  func.func @_vq_kernel(%arg0: i32, %arg1: i32, %arg2: memref<1x4x128xf32, #tpu.memory_space<vmem>>, %arg3: memref<5x8xf32, #tpu.memory_space<vmem>>, %arg4: memref<1x4x128xf32, #tpu.memory_space<vmem>>, %arg5: memref<8x128xf32, #tpu.memory_space<vmem>>) attributes {dimension_semantics = [#tpu.dimension_semantics<parallel>, #tpu.dimension_semantics<parallel>], iteration_bounds = array<i64: 2, 2>, scalar_prefetch = 0 : i64, scratch_operands = 0 : i64, tpu.core_type = #tpu.core_type<tc>, window_params = [{transform_indices = @transform_0, window_bounds = array<i64: 1, 4, 128>}, {pipeline_mode = #tpu.pipeline_mode<synchronous>, transform_indices = @transform_1, window_bounds = array<i64: 5, 8>}, {transform_indices = @transform_2, window_bounds = array<i64: 1, 4, 128>}, {transform_indices = @transform_3, window_bounds = array<i64: 8, 128>}]} {
    %c0 = arith.constant 0 : index
    %c0_0 = arith.constant 0 : index
    %c0_1 = arith.constant 0 : index
    %0 = vector.load %arg2[%c0, %c0_0, %c0_1] : memref<1x4x128xf32, #tpu.memory_space<vmem>>, vector<1x4x128xf32>
    %1 = vector.shape_cast %0 : vector<1x4x128xf32> to vector<4x128xf32>
    %cst = arith.constant 1.000000e+00 : f32
    %2 = vector.broadcast %cst : f32 to vector<1x128xf32>
    %3 = tpu.concatenate %2, %1 in 0 : vector<1x128xf32>, vector<4x128xf32> -> vector<5x128xf32>
    %cst_2 = arith.constant 0x7F800000 : f32
    %4 = vector.broadcast %cst_2 : f32 to vector<1x128xf32>
    %c0_i32 = arith.constant 0 : i32
    %5 = vector.broadcast %c0_i32 : i32 to vector<1x128xi32>
    %c0_3 = arith.constant 0 : index
    %c0_4 = arith.constant 0 : index
    %6 = vector.load %arg3[%c0_3, %c0_4] : memref<5x8xf32, #tpu.memory_space<vmem>>, vector<5x8xf32>
    %cst_5 = arith.constant dense<0.000000e+00> : vector<8x128xf32>
    %7 = tpu.matmul %6, %3, %cst_5 {dimension_numbers = #tpu.dot_dimension_numbers<[0], [0], [1], [1], [0, 1, 1, 1], [], []>} : vector<5x8xf32>, vector<5x128xf32>, vector<8x128xf32> -> vector<8x128xf32>
    %cst_6 = arith.constant dense<0x7F800000> : vector<128xf32>
    %8 = vector.multi_reduction <minimumf>, %7, %cst_6 [0] : vector<8x128xf32> to vector<128xf32>
    %9 = vector.shape_cast %8 : vector<128xf32> to vector<1x128xf32>
    %10 = tpu.iota {dimensions = array<i32: 0>} : vector<8x128xi32>
    %11 = vector.broadcast %9 : vector<1x128xf32> to vector<8x128xf32>
    %12 = arith.cmpf ole, %7, %11 : vector<8x128xf32>
    %c8_i32 = arith.constant 8 : i32
    %13 = vector.broadcast %c8_i32 : i32 to vector<8x128xi32>
    %14 = arith.select %12, %10, %13 : vector<8x128xi1>, vector<8x128xi32>
    %cst_7 = arith.constant dense<2147483647> : vector<128xi32>
    %15 = vector.multi_reduction <minsi>, %14, %cst_7 [0] : vector<8x128xi32> to vector<128xi32>
    %16 = vector.shape_cast %15 : vector<128xi32> to vector<1x128xi32>
    %17 = arith.cmpf olt, %9, %4 : vector<1x128xf32>
    %c0_i32_8 = arith.constant 0 : i32
    %18 = vector.broadcast %c0_i32_8 : i32 to vector<1x128xi32>
    %19 = arith.addi %16, %18 : vector<1x128xi32>
    %20 = arith.select %17, %19, %5 : vector<1x128xi1>, vector<1x128xi32>
    %cst_9 = arith.constant 0.000000e+00 : f32
    %21 = vector.broadcast %cst_9 : f32 to vector<4x128xf32>
    %c1 = arith.constant 1 : index
    %c0_10 = arith.constant 0 : index
    %22 = vector.load %arg3[%c1, %c0_10] : memref<5x8xf32, #tpu.memory_space<vmem>>, vector<4x8xf32>
    %23 = tpu.iota {dimensions = array<i32: 0>} : vector<8x128xi32>
    %c0_i32_11 = arith.constant 0 : i32
    %24 = vector.broadcast %c0_i32_11 : i32 to vector<1x128xi32>
    %25 = arith.subi %20, %24 : vector<1x128xi32>
    %26 = vector.broadcast %25 : vector<1x128xi32> to vector<8x128xi32>
    %27 = arith.cmpi eq, %23, %26 : vector<8x128xi32>
    %28 = arith.extui %27 : vector<8x128xi1> to vector<8x128xi32>
    %29 = arith.sitofp %28 : vector<8x128xi32> to vector<8x128xf32>
    %cst_12 = arith.constant dense<0.000000e+00> : vector<4x128xf32>
    %30 = tpu.matmul %22, %29, %cst_12 {dimension_numbers = #tpu.dot_dimension_numbers<[1], [0], [0], [1], [0, 0, 1, 1], [], []>} : vector<4x8xf32>, vector<8x128xf32>, vector<4x128xf32> -> vector<4x128xf32>
    %31 = arith.addf %21, %30 : vector<4x128xf32>
    %cst_13 = arith.constant -5.000000e-01 : f32
    %32 = vector.broadcast %cst_13 : f32 to vector<4x128xf32>
    %33 = arith.mulf %31, %32 : vector<4x128xf32>
    %c0_14 = arith.constant 0 : index
    %c0_15 = arith.constant 0 : index
    %c0_16 = arith.constant 0 : index
    %34 = vector.load %arg4[%c0_14, %c0_15, %c0_16] : memref<1x4x128xf32, #tpu.memory_space<vmem>>, vector<1x4x128xf32>
    %35 = vector.shape_cast %34 : vector<1x4x128xf32> to vector<4x128xf32>
    %36 = vector.shape_cast %33 : vector<4x128xf32> to vector<1x4x128xf32>
    tpu.vector_store %arg4[%c0_14, %c0_15, %c0_16], %36 {strides = array<i32>} : memref<1x4x128xf32, #tpu.memory_space<vmem>>, vector<1x4x128xf32>,
    %37 = arith.subf %33, %1 : vector<4x128xf32>
    %38 = arith.mulf %37, %37 : vector<4x128xf32>
    %39 = vector.shape_cast %38 : vector<4x128xf32> to vector<1x4x128xf32>
    %cst_17 = arith.constant dense<0.000000e+00> : vector<1xf32>
    %40 = vector.multi_reduction <add>, %39, %cst_17 [1, 2] : vector<1x4x128xf32> to vector<1xf32>
    %41 = vector.shape_cast %40 : vector<1xf32> to vector<1x1x1xf32>
    %42 = vector.extract %41[0, 0, 0] : f32 from vector<1x1x1xf32>
    %43 = vector.broadcast %42 : f32 to vector<8x128xf32>
    %c0_18 = arith.constant 0 : index
    %c0_19 = arith.constant 0 : index
    %44 = vector.load %arg5[%c0_18, %c0_19] : memref<8x128xf32, #tpu.memory_space<vmem>>, vector<8x128xf32>
    tpu.vector_store %arg5[%c0_18, %c0_19], %43 {strides = array<i32>} : memref<8x128xf32, #tpu.memory_space<vmem>>, vector<8x128xf32>,
    return
  }
  func.func @transform_0(%arg0: i32, %arg1: i32) -> (i32, i32, i32) {
    %c0_i32 = arith.constant 0 : i32
    %c0_i32_0 = arith.constant 0 : i32
    return %arg0, %c0_i32, %arg1 : i32, i32, i32
  }
  func.func @transform_1(%arg0: i32, %arg1: i32) -> (i32, i32) {
    %c0_i32 = arith.constant 0 : i32
    %c0_i32_0 = arith.constant 0 : i32
    %c0_i32_1 = arith.constant 0 : i32
    return %c0_i32, %c0_i32_0 : i32, i32
  }
  func.func @transform_2(%arg0: i32, %arg1: i32) -> (i32, i32, i32) {
    %c0_i32 = arith.constant 0 : i32
    %c0_i32_0 = arith.constant 0 : i32
    return %arg0, %c0_i32, %arg1 : i32, i32, i32
  }
  func.func @transform_3(%arg0: i32, %arg1: i32) -> (i32, i32) {
    %c2_i32 = arith.constant 2 : i32
    %0 = arith.muli %arg0, %c2_i32 : i32
    %1 = arith.addi %0, %arg1 : i32
    %c0_i32 = arith.constant 0 : i32
    %c0_i32_0 = arith.constant 0 : i32
    return %1, %c0_i32 : i32, i32
  }
}

</mosaic_0001>

<bundles_post_ra>
// kernel: tpu_custom_call.1
= control target key start
LH: loop header
LB: loop body
LE: loop exit
PB: predicated region body
PF: predicated region fallthrough
CT: control target
= control target key end

     0   :  { %s1356_s0 = inlined_call_operand.hbm [shape: f32[2,4,256], index: 0, kind: input, shape index: {}]   ;;  %s1357_s1 = inlined_call_operand.hbm [shape: f32[5,8], index: 1, kind: input, shape index: {}]   ;;  %s1358_s2 = inlined_call_operand.hbm [shape: f32[2,4,256], index: 2, kind: output, shape index: {0}]   ;;  %s1359_s3 = inlined_call_operand.hbm [shape: f32[32,128], index: 3, kind: output, shape index: {1}]  }
   0x1   :  { %1377 = sst [smem:[#allocation22_spill]] %s1357_s1 }
   0x2   :  { %1378 = sst [smem:[#allocation23_spill]] %s1358_s2 }
   0x3   :  { %1379 = sst [smem:[#allocation24_spill]] %s1359_s3 }
   0x4   :  { %9 = vsyncpa [#allocation3], 0 }
   0x5   :  { %11 = vsyncpa [#allocation3 + $0x1], 0 }
   0x6   :  { %12 = vsyncpa [#allocation6], 0 }
   0x7   :  { %13 = vsyncpa [#allocation4], 0 }
   0x8   :  { %15 = vsyncpa [#allocation4 + $0x1], 0 }
   0x9   :  { %16 = vsyncpa [#allocation9], 0 }
   0xa   :  { %18 = vsyncpa [#allocation9 + $0x1], 0  ;;  %s1042_s12 = smov 0   ;;  %s1044_s13 = smov 0  }
   0xb   :  { %s1046_s14 = smov 0   ;;  %s1048_s15 = smov 0  }
   0xc   :  { %s1050_s16 = smov 0   ;;  %s1052_s17 = smov 0  }
   0xd   :  { %s1054_s18 = smov 0   ;;  %s1056_s19 = smov 0  }
   0xe   :  { %s1058_s20 = smov 0   ;;  %s1060_s21 = smov 0  }
   0xf   :  { %s1062_s22 = smov 0  }
  0x10 LB: > { %1380 = sst [smem:[#allocation14_spill]] %s973_s12  ;;  %s632_s23 = sadd.s32 4294967295, %s1013_s22   ;;  %s1013_s22 = sphi %s1062_s22, %s24_s22   ;;  %s1009_s21 = sphi %s1060_s21, %s1430_s21   ;;  %s1005_s20 = sphi %s1058_s20, %s1429_s20   ;;  %s1001_s19 = sphi %s1056_s19, %s1428_s19   ;;  %s997_s18 = sphi %s1054_s18, %s1427_s18   ;;  %s993_s17 = sphi %s1052_s17, %s1426_s17   ;;  %s989_s16 = sphi %s1050_s16, %s1425_s16   ;;  %s985_s15 = sphi %s1048_s15, %s1424_s15   ;;  %s981_s14 = sphi %s1046_s14, %s1423_s14   ;;  %s977_s13 = sphi %s1044_s13, %s1422_s13   ;;  %s973_s12 = sphi %s1042_s12, %s1421_s12  }
  0x11   : > { %1381 = sst [smem:[#allocation15_spill]] %s977_s13  ;;  %s633_s24 = sadd.s32 4294967294, %s1013_s22  }
  0x12   : > { %1382 = sst [smem:[#allocation16_spill]] %s985_s15  ;;  %p58_p0 = scmp.ne.s32.totalorder %s989_s16, %s985_s15 }
  0x13   : > { %1383 = sst [smem:[#allocation17_spill]] %s997_s18  ;;  %p1101_p1 = scmp.eq.s32.totalorder %s632_s23, 0 }
  0x14   : > { %p1105_p2 = scmp.eq.s32.totalorder %s632_s23, 3  ;;  %p111_p3 = scmp.eq.s32.totalorder %s633_s24, 3 }
  0x15   : > { %s1384_s25 = scalar_select %p1101_p1, 1, 0 }
  0x16   : > { %s1385_s26 = scalar_select %p1105_p2, 1, 0 }
  0x17   : > { %p1111_p4 = por %p1101_p1, %p58_p0  ;;  %p134_p5 = scmp.ne.s32.totalorder %s981_s14, %s977_s13 }
  0x18   : > { %p1117_p6 = por %p111_p3, %p58_p0  ;;  %p140_p7 = scmp.ne.s32.totalorder %s977_s13, %s973_s12 }
  0x19   : > { %s1386_s27 = scalar_select %p1111_p4, 1, 0 }
  0x1a   : > { %s1387_s28 = scalar_select %p1117_p6, 1, 0 }
  0x1b   : > { %p1125_p8 = por %p134_p5, %p1105_p2  ;;  %p636_p9 = scmp.ge.s32.totalorder %s1013_s22, 1 }
  0x1c   : > { %1388 = sst [smem:[#allocation18_spill]] %s1387_s28  ;;  %p1130_p10 = por %p140_p7, %p111_p3 }
  0x1d   : > { %s1389_s29 = scalar_select %p1125_p8, 1, 0 }
  0x1e   : > { %s1391_s30 = scalar_select %p1130_p10, 1, 0 }
  0x1f   : > { %1390 = sst [smem:[#allocation19_spill]] %s1389_s29  ;;  %p148_p11 = scmp.lt.s32.totalorder %s1013_s22, 5 }
  0x20   : > { %1392 = sst [smem:[#allocation20_spill]] %s1391_s30  ;;  %s1015_s5 = smov [#allocation5]  }
  0x21   : > { %p1135_p12 = pnand %p636_p9, %p148_p11  ;;  %s161_s6 = sshll.u32 %s1015_s5, 4  ;;  %s162_s6 = int_to_ptr.vmem [resolvable:$true] %s161_s6 }
  0x22   : > { %s33_s8 = sadd.s32 1, %s1005_s20  ;;  %s1395_s1 = sld [smem:[#allocation22_spill]] }
  0x23   : > { %s1393_s4 = scalar_select %p1135_p12, 1, 0 }
  0x24   : > { %p686_p13 = pneg %p1135_p12 }
  0x26   : > { %p1143_p0 = pnand %p686_p13, %p1101_p1 }
  0x28   : > { %s797_s11 = scalar_lea.hbm %s1395_s1, 128  ;;  %p799_p5 = pneg %p1143_p0 }
  0x29   : > { %p798_p3 = scmp.ne.s32.totalorder %s1395_s1, %s797_s11  ;;  %p804_p11 = scmp.lt.u32.totalorder %s797_s11, %s1395_s1 }
  0x2b   : > { %p800_p7 = pnand %p799_p5, %p798_p3 }
  0x2d   : > { %p801_p9 = pneg %p800_p7 }
  0x2f   : > { %p806_p13 = pnand %p804_p11, %p801_p9 }
  0x31   : > { %809 = shalt.err (!%p806_p13)
}
  0x32   : > { %s810_s12 = scalar_lea.vmem %s162_s6, 128  ;;  %p818_p1 = scmp.lt.s32.totalorder %s162_s6, %s162_s6 }
  0x33   : > { %p811_p10 = scmp.ne.s32.totalorder %s162_s6, %s810_s12  ;;  %p819_p4 = scmp.lt.s32.totalorder %s810_s12, %s810_s12 }
  0x35   : > { %p813_p6 = pnand %p811_p10, %p799_p5  ;;  %p820_p12 = por %p819_p4, %p818_p1 }
  0x37   : > { %p814_p8 = pneg %p813_p6 }
  0x39   : > { %p821_p2 = pnand %p820_p12, %p814_p8 }
  0x3b   : > { %824 = shalt.err (!%p821_p2)
}
  0x3c   : > { %689 = dma.hbm_to_vmem [thread:$0]  (!%p1143_p0), %s1395_s1, 128, %s162_s6, [#allocation6]  }
  0x3d   : > { %p34_p1 = scmp.ge.s32.totalorder %s33_s8, 2  ;;  %s36_s12 = sadd.s32 1, %s1009_s21 }
  0x3e   : > { %s45_s30 = sadd.s32 1, %s993_s17  ;;  %p52_p2 = scmp.ne.s32.totalorder %s993_s17, %s989_s16 }
  0x3f   : > { %s1432_s8 = smov (%p34_p1, %s33_s8), 0  ;;  %s1434_s12 = smov (!%p34_p1, %s36_s12), %s1009_s21 }
  0x40   : > { %s41_s7 = ssub.s32 %s1005_s20, %s1432_s8  ;;  %p53_p4 = scmp.eq.s32.totalorder %s1013_s22, 0 }
  0x41   : > { %p38_p6 = scmp.ge.s32.totalorder %s1434_s12, 2  ;;  %p1396_p8 = scmp.ne.s32.totalorder %s1385_s26, 0 }
  0x42   : > { %p1180_p12 = por %p53_p4, %p52_p2  ;;  %s634_s23 = sshll.u32 %s1009_s21, 1 }
  0x43   : > { %p1176_p10 = por %p1396_p8, %p52_p2  ;;  %s1436_s12 = smov (%p38_p6, %s1434_s12), 0 }
  0x44   : > { %s118_s24 = sadd.s32 %s1005_s20, %s634_s23  ;;  %s124_s5 = sadd.s32 1, %s981_s14 }
  0x45   : > { %s1397_s11 = scalar_select %p1176_p10, 1, 0 }
  0x46   : > { %s40_s9 = ssub.s32 %s1009_s21, %s1436_s12  ;;  %s635_s26 = sshll.u32 %s1436_s12, 1 }
  0x47   : > { %1398 = sst [smem:[#allocation21_spill]] %s1397_s11  ;;  %s42_s10 = sor.u32 %s41_s7, %s40_s9 }
  0x48   : > { %s120_s1 = sadd.s32 %s635_s26, %s1432_s8  ;;  %p43_p0 = scmp.eq.s32.totalorder %s42_s10, 0 }
  0x49   : > { %s121_s28 = ssub.s32 %s118_s24, %s120_s1  ;;  %p702_p5 = scmp.lt.s32.totalorder %s1013_s22, 4 }
  0x4a   : > { %p122_p3 = scmp.eq.s32.totalorder %s121_s28, 0  ;;  %s172_s29 = sand.u32 1, %s993_s17  }
  0x4b   : > { %s1195_s15 = scalar_select %p43_p0, %s993_s17, %s45_s30  }
  0x4c   : > { %s1198_s3 = scalar_select %p122_p3, %s981_s14, %s124_s5  }
  0x4d   : > { %s641_s13 = sshll.u32 %s118_s24, 6  ;;  %s639_s2 = sshll.u32 %s172_s29, 2 }
  0x4e   : > { %s1204_s23 = scalar_lea.hbm %s1356_s0, %s641_s13  ;;  %s176_s7 = scalar_lea.vmem [#allocation2], %s639_s2 }
  0x4f   : > { %s185_s1 = sshll.u32 %s176_s7, 4  ;;  %p1208_p7 = pnand %p702_p5, %p1180_p12  ;;  %s1212_s1 = int_to_ptr.vmem [resolvable:$true] %s185_s1 }
  0x50   : > { %s173_s30 = scalar_lea.sflag [#allocation3], %s172_s29  ;;  %s825_s24 = scalar_lea.hbm %s1204_s23, 64 }
  0x51   : > { %p826_p9 = scmp.ne.s32.totalorder %s1204_s23, %s825_s24  ;;  %p827_p11 = pneg %p1208_p7 }
  0x52   : > { %s830_s18 = scalar_lea.hbm %s1356_s0, 256  ;;  %p831_p2 = scmp.lt.u32.totalorder %s1204_s23, %s1356_s0 }
  0x53   : > { %p828_p13 = pnand %p827_p11, %p826_p9  ;;  %p832_p4 = scmp.lt.u32.totalorder %s830_s18, %s825_s24 }
  0x54   : > { %p834_p8 = scmp.lt.u32.totalorder %s825_s24, %s1204_s23 }
  0x55   : > { %p829_p1 = pneg %p828_p13  ;;  %p833_p6 = por %p832_p4, %p831_p2 }
  0x57   : > { %p835_p12 = por %p834_p8, %p833_p6 }
  0x59   : > { %p836_p0 = pnand %p835_p12, %p829_p1 }
  0x5b   : > { %839 = shalt.err (!%p836_p0)
}
  0x5c   : > { %s840_s29 = scalar_lea.vmem %s1212_s1, 64  ;;  %s1016_s5 = smov [#allocation2]  }
  0x5d   : > { %p841_p3 = scmp.ne.s32.totalorder %s1212_s1, %s840_s29  ;;  %s845_s9 = sshll.u32 %s1016_s5, 4  ;;  %s846_s9 = int_to_ptr.vmem [resolvable:$false] %s845_s9 }
  0x5e   : > { %s847_s26 = scalar_lea.vmem %s846_s9, 128  ;;  %p848_p13 = scmp.lt.s32.totalorder %s1212_s1, %s846_s9 }
  0x5f   : > { %p843_p5 = pnand %p841_p3, %p827_p11  ;;  %p849_p2 = scmp.lt.s32.totalorder %s847_s26, %s840_s29 }
  0x61   : > { %p844_p9 = pneg %p843_p5  ;;  %p850_p4 = por %p849_p2, %p848_p13 }
  0x63   : > { %p851_p6 = pnand %p850_p4, %p844_p9 }
  0x65   : > { %854 = shalt.err (!%p851_p6)
}
  0x66   : > { %693 = dma.hbm_to_vmem [thread:$0]  (!%p1208_p7), %s1204_s23, 64, %s1212_s1, %s173_s30  }
  0x67   : > { %p1401_p1 = scmp.ne.s32.totalorder %s1393_s4, 0 }
  0x68   : > { %s1242_s10 = sand.u32 (!%p1401_p1), 1, %s989_s16   ;;  %p1402_p11 = scmp.ne.s32.totalorder (!%p1401_p1), %s1386_s27, 0 }
  0x69   : > { %194 = sbr.rel (%p1401_p1) target bundleno = 927 (0x39f), region = 28  ;;  %s643_s7 = sshll.u32 (!%p1401_p1), %s1242_s10, 2 }
  0x6a   : > { %s197_s24 = scalar_lea.sflag (!%p1401_p1), [#allocation3], %s1242_s10  ;;  %s200_s2 = scalar_lea.vmem (!%p1401_p1), [#allocation2], %s643_s7 }
  0x70   : > { %956 = dma.done.wait (%p1402_p11), %s197_s24, 64  }
  0x71   : > { %958 = vsyncadd (%p1402_p11), %s197_s24, 4294967232  ;;  %p1403_p7 = scmp.ne.s32.totalorder %s1384_s25, 0 }
  0x73   : > { %960 = dma.done.wait (%p1403_p7), [#allocation6], 128  }
  0x74   : > { %962 = vsyncadd (%p1403_p7), [#allocation6], 4294967168  ;;  %v1017_v0 = vmov 0.0   ;;  %vm1018_vm0 = vmmov 0   ;;  %v240_v1 = vld [vmem:[#allocation5] sm:$0x1f]  ;;  %v357_v11 = vlaneseq }
  0x75   : > { %664 = vmatprep.subr.mxu0 %v1017_v0  ;;  %666 = vmatprep.mubr.msk.f32.mxu0 %vm1018_vm0, %v1017_v0  ;;  %v234_v2 = vld [vmem:[%s200_s2] sm:$0xf]  ;;  %vm238_vm1 = vcmask 1040384   ;;  %vm277_vm2 = vcmask 1044480   ;;  %vm273_vm3 = vcmask 39936   ;;  %vm376_vm9 = vcmask 64512  }
  0x76   : > { %669 = vmatprep.subr.mxu1 %v1017_v0  ;;  %671 = vmatprep.mubr.msk.f32.mxu1 %vm1018_vm0, %v1017_v0  ;;  %v236_v3 = vrot.slane %v234_v2, 7  ;;  %v358_v14 = vshrl.u32 %v357_v11, 7  ;;  %v372_v24 = vld [vmem:[#allocation5 + $0x1] sm:$0xf]  ;;  %s1404_s25 = sld [smem:[#allocation17_spill]]  ;;  %v1019_v25 = vmov 1.0  }
  0x77   : > { %241 = vxpose.xlu0.b32.start.end [1/1] (short) (narrow) %v240_v1, 8  ;;  %s224_s27 = scalar_lea.vmem [#allocation7], %s643_s7  ;;  %vm454_vm11 = vcmask 1043456   ;;  %s654_s23 = sshll.u32 %s1001_s19, 1 }
  0x78   : > { %v239_v4 = vsel %vm238_vm1, 1.0, %v236_v3  ;;  %s1406_s18 = sld [smem:[#allocation23_spill]]  ;;  %s488_s29 = sshll.u32 %s224_s27, 4  ;;  %s489_s29 = int_to_ptr.vmem [resolvable:$true] %s488_s29 }
  0x79   : > { %665 = vmatpush3.msk.msra.mxu0 %vm277_vm2, %v239_v4  ;;  %s468_s5 = scalar_lea.sflag [#allocation4], %s1242_s10  ;;  %s855_s9 = scalar_lea.vmem %s489_s29, 64 }
  0x7a   : > { %p856_p8 = scmp.ne.s32.totalorder %s489_s29, %s855_s9  ;;  %s1020_s26 = smov [#allocation7]  }
  0x7b   : > { %s859_s7 = sshll.u32 %s1020_s26, 4  ;;  %s860_s7 = int_to_ptr.vmem [resolvable:$false] %s859_s7 }
  0x7c   : > { %s1260_s1 = sadd.s32 %s1404_s25, %s654_s23  ;;  %p857_p12 = pnand %p856_p8, %p1176_p10 }
  0x7d   : > { %s655_s28 = sshll.u32 %s1260_s1, 6  ;;  %s861_s19 = scalar_lea.vmem %s860_s7, 128 }
  0x7e   : > { %s1407_s11 = smov %s1406_s18  ;;  %s1266_s6 = scalar_lea.hbm %s1406_s18, %s655_s28 }
  0x7f   : > { %p858_p0 = pneg %p857_p12  ;;  %p862_p3 = scmp.lt.s32.totalorder %s489_s29, %s860_s7 }
  0x80   : > { %p863_p5 = scmp.lt.s32.totalorder %s861_s19, %s855_s9 }
  0x82   : > { %p864_p9 = por %p863_p5, %p862_p3 }
  0x84   : > { %p865_p13 = pnand %p864_p9, %p858_p0 }
  0xf7   : > { %v257_v5 = vpop.trf.xlu0 }
  0xf8   : > { %667 = vmatmul.mubr.msk.f32.vlgmr.msra.gmra.mrb[0].mxu0 %vm273_vm3, %v257_v5 }
 0x1cb   : > { %v347_v6 = vpop.f32.mrb[0].mxu0 }
 0x1cc   : > { %v351_v7 = vrot.slane %v347_v6, 4  ;;  %v668_v8 = vpop.f32.mrb[1].mxu0 }
 0x1ce   : > { %v352_v9 = vmin.f32 %v347_v6, %v351_v7 }
 0x1d0   : > { %v353_v10 = vrot.slane %v352_v9, 2 }
 0x1d2   : > { %v354_v12 = vmin.f32 %v352_v9, %v353_v10 }
 0x1d4   : > { %v355_v13 = vrot.slane %v354_v12, 1 }
 0x1d6   : > { %v356_v15 = vmin.f32 %v354_v12, %v355_v13 }
 0x1d8   : > { %vm359_vm4 = vcmp.le.f32.partialorder %v347_v6, %v356_v15  ;;  %vm370_vm8 = vcmp.lt.f32.partialorder %v356_v15, inf }
 0x1d9   : > { %v360_v16 = vsel %vm359_vm4, %v358_v14, 8 }
 0x1da   : > { %v361_v17 = vrot.slane %v360_v16, 4 }
 0x1dc   : > { %vm362_vm5 = vcmp.lt.s32.totalorder %v360_v16, %v361_v17 }
 0x1dd   : > { %v363_v18 = vsel %vm362_vm5, %v360_v16, %v361_v17 }
 0x1de   : > { %v364_v19 = vrot.slane %v363_v18, 2 }
 0x1e0   : > { %vm365_vm6 = vcmp.lt.s32.totalorder %v363_v18, %v364_v19 }
 0x1e1   : > { %v366_v20 = vsel %vm365_vm6, %v363_v18, %v364_v19 }
 0x1e2   : > { %v367_v21 = vrot.slane %v366_v20, 1 }
 0x1e4   : > { %vm368_vm7 = vcmp.lt.s32.totalorder %v366_v20, %v367_v21 }
 0x1e5   : > { %v369_v22 = vsel %vm368_vm7, %v366_v20, %v367_v21 }
 0x1e6   : > { %v371_v23 = vsel %vm370_vm8, %v369_v22, 0 }
 0x1e7   : > { %vm373_vm10 = vcmp.eq.s32.totalorder %v358_v14, %v371_v23 }
 0x1e8   : > { %670 = vmatpush3.msk.msra.mxu1 %vm373_vm10, %v1019_v25 }
 0x1e9   : > { %672 = vmatmul.mubr.msk.f32.vlgmr.msra.gmra.mrb[0].mxu1 %vm376_vm9, %v372_v24 }
 0x2bc   : > { %v446_v26 = vpop.f32.mrb[0].mxu1 }
 0x2bd   : > { %v450_v27 = vmul.f32 -0.5, %v446_v26  ;;  %v673_v28 = vpop.f32.mrb[1].mxu1 }
 0x2bf   : > { %451 = vst [vmem:[%s224_s27] sm:$0xf] %v450_v27  ;;  %v452_v29 = vsub.f32 %v450_v27, %v234_v2 }
 0x2c1   : > { %v453_v30 = vmul.f32 %v452_v29, %v452_v29 }
 0x2c3   : > { %v455_v31 = vsel %vm454_vm11, %v453_v30, 0.0 }
 0x2c4   : > { %456 = vadd.xlane.f32.xlu0 %v455_v31 }
 0x2c5   : > { %868 = shalt.err (!%p865_p13)
}
 0x2c6   : > { %s869_s10 = scalar_lea.hbm %s1266_s6, 64  ;;  %s873_s25 = scalar_lea.hbm %s1407_s11, 256 }
 0x2c7   : > { %p870_p2 = scmp.ne.s32.totalorder %s1266_s6, %s869_s10  ;;  %p874_p1 = scmp.lt.u32.totalorder %s1266_s6, %s1407_s11 }
 0x2c8   : > { %p875_p11 = scmp.lt.u32.totalorder %s873_s25, %s869_s10  ;;  %p877_p8 = scmp.lt.u32.totalorder %s869_s10, %s1266_s6 }
 0x2c9   : > { %p871_p4 = pnand %p870_p2, %p1176_p10 }
 0x2ca   : > { %p876_p7 = por %p875_p11, %p874_p1 }
 0x2cb   : > { %p872_p6 = pneg %p871_p4 }
 0x2cc   : > { %p878_p12 = por %p877_p8, %p876_p7 }
 0x2ce   : > { %p879_p0 = pnand %p878_p12, %p872_p6 }
 0x2d0   : > { %882 = shalt.err (!%p879_p0)
}
 0x2d1   : > { %s1408_s28 = sld [smem:[#allocation15_spill]]  ;;  %s1409_s30 = sld [smem:[#allocation19_spill]] }
 0x2d2   : > { %682 = dma.vmem_to_hbm [thread:$0]  (%p1176_p10), %s489_s29, 64, %s1266_s6, %s468_s5  }
 0x2d3   : > { %s657_s7 = sshll.u32 %s1260_s1, 7  ;;  %s1410_s5 = sld [smem:[#allocation24_spill]] }
 0x2d4   : > { %s1021_s1 = smov [#allocation8]  }
 0x2d5   : > { %s887_s2 = sshll.u32 %s1021_s1, 4  ;;  %s888_s2 = int_to_ptr.vmem [resolvable:$false] %s887_s2 }
 0x2d6   : > { %s889_s25 = scalar_lea.vmem %s888_s2, 256 }
 0x2d7   : > { %s229_s13 = sand.u32 1, %s1408_s28   ;;  %p1411_p3 = scmp.ne.s32.totalorder %s1409_s30, 0 }
 0x2d8   : > { %s646_s18 = sshll.u32 %s229_s13, 3  ;;  %s473_s10 = scalar_lea.sflag [#allocation9], %s229_s13 }
 0x2d9   : > { %s231_s9 = scalar_lea.vmem [#allocation8], %s646_s18  ;;  %s1293_s19 = scalar_lea.hbm %s1410_s5, %s657_s7 }
 0x2da   : > { %s503_s26 = sshll.u32 %s231_s9, 4  ;;  %s1288_s26 = int_to_ptr.vmem [resolvable:$true] %s503_s26 }
 0x2db   : > { %s883_s24 = scalar_lea.vmem %s1288_s26, 128  ;;  %p890_p13 = scmp.lt.s32.totalorder %s1288_s26, %s888_s2 }
 0x2dc   : > { %p884_p10 = scmp.ne.s32.totalorder %s1288_s26, %s883_s24  ;;  %p891_p2 = scmp.lt.s32.totalorder %s889_s25, %s883_s24 }
 0x2de   : > { %p885_p5 = pnand %p884_p10, %p1411_p3  ;;  %p892_p4 = por %p891_p2, %p890_p13 }
 0x2e0   : > { %p886_p9 = pneg %p885_p5 }
 0x2e2   : > { %p893_p6 = pnand %p892_p4, %p886_p9 }
 0x351   : > { %v457_v32 = vpop.xlane.xlu0 %456 }
 0x352   : > { %v458_v33 = vrot.slane %v457_v32, 4 }
 0x354   : > { %v459_v34 = vadd.f32 %v458_v33, %v457_v32 }
 0x356   : > { %v460_v35 = vrot.slane %v459_v34, 2 }
 0x358   : > { %v461_v36 = vadd.f32 %v460_v35, %v459_v34 }
 0x35a   : > { %v462_v37 = vrot.slane %v461_v36, 1 }
 0x35c   : > { %v463_v38 = vadd.f32 %v462_v37, %v461_v36 }
 0x35e   : > { %674 = vpush %v463_v38 }
 0x38f   : > { %s675_s4 = spop %674 }
 0x390   : > { %v465_v39 = vstv %s675_s4 }
 0x391   : > { %466 = vst [vmem:[%s231_s9] sm:$0xff] %v465_v39 }
 0x392   : > { %896 = shalt.err (!%p893_p6)
}
 0x393   : > { %s897_s27 = scalar_lea.hbm %s1293_s19, 128  ;;  %s901_s13 = scalar_lea.hbm %s1410_s5, 512 }
 0x394   : > { %p898_p1 = scmp.ne.s32.totalorder %s1293_s19, %s897_s27  ;;  %p902_p8 = scmp.lt.u32.totalorder %s1293_s19, %s1410_s5 }
 0x395   : > { %p903_p12 = scmp.lt.u32.totalorder %s901_s13, %s897_s27  ;;  %p905_p10 = scmp.lt.u32.totalorder %s897_s27, %s1293_s19 }
 0x396   : > { %p899_p11 = pnand %p898_p1, %p1411_p3 }
 0x397   : > { %p904_p0 = por %p903_p12, %p902_p8 }
 0x398   : > { %p900_p7 = pneg %p899_p11 }
 0x399   : > { %p906_p5 = por %p905_p10, %p904_p0 }
 0x39b   : > { %p907_p9 = pnand %p906_p5, %p900_p7 }
 0x39d   : > { %910 = shalt.err (!%p907_p9)
}
 0x39e   : > { %683 = dma.vmem_to_hbm [thread:$0]  (%p1411_p3), %s1288_s26, 128, %s1293_s19, %s473_s10  }
 0x39f PF: > { %s1412_s7 = sld [smem:[#allocation16_spill]]  ;;  %s1413_s4 = sld [smem:[#allocation18_spill]] }
 0x3a0   : > { %p704_p13 = scmp.ge.s32.totalorder %s1013_s22, 2 }
 0x3a5   : > { %s515_s6 = sand.u32 1, %s1412_s7   ;;  %p1414_p2 = scmp.ne.s32.totalorder %s1413_s4, 0 }
 0x3a6   : > { %s516_s29 = scalar_lea.sflag [#allocation4], %s515_s6 }
 0x3a7   : > { %p695_p4 = pnand %p704_p13, %p1414_p2 }
 0x3a9   : > { %964 = dma.done.wait (!%p695_p4), %s516_s29, 64  }
 0x3aa   : > { %966 = vsyncadd (!%p695_p4), %s516_s29, 4294967232  ;;  %s1415_s24 = sld [smem:[#allocation14_spill]]  ;;  %s1416_s1 = sld [smem:[#allocation20_spill]] }
 0x3b0   : > { %s524_s2 = sand.u32 1, %s1415_s24   ;;  %p1417_p6 = scmp.ne.s32.totalorder %s1416_s1, 0 }
 0x3b1   : > { %s525_s30 = scalar_lea.sflag [#allocation9], %s524_s2 }
 0x3b2   : > { %p698_p1 = pnand %p704_p13, %p1417_p6 }
 0x3b4   : > { %968 = dma.done.wait (!%p698_p1), %s525_s30, 128  }
 0x3b5   : > { %970 = vsyncadd (!%p698_p1), %s525_s30, 4294967168  ;;  %s24_s22 = sadd.s32 1, %s1013_s22   ;;  %s1418_s26 = sld [smem:[#allocation15_spill]] }
 0x3b6   : > { %p21_p3 = scmp.ge.s32.totalorder %s24_s22, 6   ;;  %s1419_s19 = smov %s1195_s15 }
 0x3b7   : > { %s1420_s10 = smov %s1436_s12  ;;  %s1422_s13 = smov %s981_s14 }
 0x3b8   : > { %s1423_s14 = smov %s1198_s3  ;;  %s1424_s15 = smov %s989_s16 }
 0x3b9   : > { %s1425_s16 = smov %s993_s17  ;;  %s1426_s17 = smov %s1419_s19 }
 0x3ba   : > { %s1427_s18 = smov %s1005_s20  ;;  %s1428_s19 = smov %s1009_s21 }
 0x3bb   : > { %s1421_s12 = smov %s1418_s26  ;;  %s1429_s20 = smov %s1432_s8 }
 0x3bc   : > { %s1430_s21 = smov %s1420_s10  ;;  %23 = sbr.rel (!%p21_p3) target bundleno = 16 (0x10), region = 94 }
 0x3c3   :  { %530 = vsyncpa [#allocation3], 1 }
 0x3c4   :  { %532 = vsyncpa [#allocation3 + $0x1], 1 }
 0x3c5   :  { %533 = vsyncpa [#allocation6], 1 }
 0x3c6   :  { %534 = vsyncpa [#allocation4], 1 }
 0x3c7   :  { %536 = vsyncpa [#allocation4 + $0x1], 1 }
 0x3c8   :  { %537 = vsyncpa [#allocation9], 1 }
 0x3c9   :  { %539 = vsyncpa [#allocation9 + $0x1], 1 }

// kernel: tpu_custom_call.1
= control target key start
LH: loop header
LB: loop body
LE: loop exit
PB: predicated region body
PF: predicated region fallthrough
CT: control target
= control target key end

     0   :  { %s1356_s0 = inlined_call_operand.hbm [shape: f32[2,4,256], index: 0, kind: input, shape index: {}]   ;;  %s1357_s1 = inlined_call_operand.hbm [shape: f32[5,8], index: 1, kind: input, shape index: {}]   ;;  %s1358_s2 = inlined_call_operand.hbm [shape: f32[2,4,256], index: 2, kind: output, shape index: {0}]   ;;  %s1359_s3 = inlined_call_operand.hbm [shape: f32[32,128], index: 3, kind: output, shape index: {1}]  }
   0x1   :  { %1377 = sst [smem:[#allocation22_spill]] %s1357_s1 }
   0x2   :  { %1378 = sst [smem:[#allocation23_spill]] %s1358_s2 }
   0x3   :  { %1379 = sst [smem:[#allocation24_spill]] %s1359_s3 }
   0x4   :  { %9 = vsyncpa [#allocation3], 0 }
   0x5   :  { %11 = vsyncpa [#allocation3 + $0x1], 0 }
   0x6   :  { %12 = vsyncpa [#allocation6], 0 }
   0x7   :  { %13 = vsyncpa [#allocation4], 0 }
   0x8   :  { %15 = vsyncpa [#allocation4 + $0x1], 0 }
   0x9   :  { %16 = vsyncpa [#allocation9], 0 }
   0xa   :  { %18 = vsyncpa [#allocation9 + $0x1], 0  ;;  %s1042_s12 = smov 0   ;;  %s1044_s13 = smov 0  }
   0xb   :  { %s1046_s14 = smov 0   ;;  %s1048_s15 = smov 0  }
   0xc   :  { %s1050_s16 = smov 0   ;;  %s1052_s17 = smov 0  }
   0xd   :  { %s1054_s18 = smov 0   ;;  %s1056_s19 = smov 0  }
   0xe   :  { %s1058_s20 = smov 0   ;;  %s1060_s21 = smov 0  }
   0xf   :  { %s1062_s22 = smov 0  }
  0x10 LB: > { %1380 = sst [smem:[#allocation14_spill]] %s973_s12  ;;  %s632_s23 = sadd.s32 4294967295, %s1013_s22   ;;  %s1013_s22 = sphi %s1062_s22, %s24_s22   ;;  %s1009_s21 = sphi %s1060_s21, %s1430_s21   ;;  %s1005_s20 = sphi %s1058_s20, %s1429_s20   ;;  %s1001_s19 = sphi %s1056_s19, %s1428_s19   ;;  %s997_s18 = sphi %s1054_s18, %s1427_s18   ;;  %s993_s17 = sphi %s1052_s17, %s1426_s17   ;;  %s989_s16 = sphi %s1050_s16, %s1425_s16   ;;  %s985_s15 = sphi %s1048_s15, %s1424_s15   ;;  %s981_s14 = sphi %s1046_s14, %s1423_s14   ;;  %s977_s13 = sphi %s1044_s13, %s1422_s13   ;;  %s973_s12 = sphi %s1042_s12, %s1421_s12  }
  0x11   : > { %1381 = sst [smem:[#allocation15_spill]] %s977_s13  ;;  %s633_s24 = sadd.s32 4294967294, %s1013_s22  }
  0x12   : > { %1382 = sst [smem:[#allocation16_spill]] %s985_s15  ;;  %p58_p0 = scmp.ne.s32.totalorder %s989_s16, %s985_s15 }
  0x13   : > { %1383 = sst [smem:[#allocation17_spill]] %s997_s18  ;;  %p1101_p1 = scmp.eq.s32.totalorder %s632_s23, 0 }
  0x14   : > { %p1105_p2 = scmp.eq.s32.totalorder %s632_s23, 3  ;;  %p111_p3 = scmp.eq.s32.totalorder %s633_s24, 3 }
  0x15   : > { %s1384_s25 = scalar_select %p1101_p1, 1, 0 }
  0x16   : > { %s1385_s26 = scalar_select %p1105_p2, 1, 0 }
  0x17   : > { %p1111_p4 = por %p1101_p1, %p58_p0  ;;  %p134_p5 = scmp.ne.s32.totalorder %s981_s14, %s977_s13 }
  0x18   : > { %p1117_p6 = por %p111_p3, %p58_p0  ;;  %p140_p7 = scmp.ne.s32.totalorder %s977_s13, %s973_s12 }
  0x19   : > { %s1386_s27 = scalar_select %p1111_p4, 1, 0 }
  0x1a   : > { %s1387_s28 = scalar_select %p1117_p6, 1, 0 }
  0x1b   : > { %p1125_p8 = por %p134_p5, %p1105_p2  ;;  %p636_p9 = scmp.ge.s32.totalorder %s1013_s22, 1 }
  0x1c   : > { %1388 = sst [smem:[#allocation18_spill]] %s1387_s28  ;;  %p1130_p10 = por %p140_p7, %p111_p3 }
  0x1d   : > { %s1389_s29 = scalar_select %p1125_p8, 1, 0 }
  0x1e   : > { %s1391_s30 = scalar_select %p1130_p10, 1, 0 }
  0x1f   : > { %1390 = sst [smem:[#allocation19_spill]] %s1389_s29  ;;  %p148_p11 = scmp.lt.s32.totalorder %s1013_s22, 5 }
  0x20   : > { %1392 = sst [smem:[#allocation20_spill]] %s1391_s30  ;;  %s1015_s5 = smov [#allocation5]  }
  0x21   : > { %p1135_p12 = pnand %p636_p9, %p148_p11  ;;  %s161_s6 = sshll.u32 %s1015_s5, 4  ;;  %s162_s6 = int_to_ptr.vmem [resolvable:$true] %s161_s6 }
  0x22   : > { %s33_s8 = sadd.s32 1, %s1005_s20  ;;  %s1395_s1 = sld [smem:[#allocation22_spill]] }
  0x23   : > { %s1393_s4 = scalar_select %p1135_p12, 1, 0 }
  0x24   : > { %p686_p13 = pneg %p1135_p12 }
  0x26   : > { %p1143_p0 = pnand %p686_p13, %p1101_p1 }
  0x28   : > { %s797_s11 = scalar_lea.hbm %s1395_s1, 128  ;;  %p799_p5 = pneg %p1143_p0 }
  0x29   : > { %p798_p3 = scmp.ne.s32.totalorder %s1395_s1, %s797_s11  ;;  %p804_p11 = scmp.lt.u32.totalorder %s797_s11, %s1395_s1 }
  0x2b   : > { %p800_p7 = pnand %p799_p5, %p798_p3 }
  0x2d   : > { %p801_p9 = pneg %p800_p7 }
  0x2f   : > { %p806_p13 = pnand %p804_p11, %p801_p9 }
  0x31   : > { %809 = shalt.err (!%p806_p13)
}
  0x32   : > { %s810_s12 = scalar_lea.vmem %s162_s6, 128  ;;  %p818_p1 = scmp.lt.s32.totalorder %s162_s6, %s162_s6 }
  0x33   : > { %p811_p10 = scmp.ne.s32.totalorder %s162_s6, %s810_s12  ;;  %p819_p4 = scmp.lt.s32.totalorder %s810_s12, %s810_s12 }
  0x35   : > { %p813_p6 = pnand %p811_p10, %p799_p5  ;;  %p820_p12 = por %p819_p4, %p818_p1 }
  0x37   : > { %p814_p8 = pneg %p813_p6 }
  0x39   : > { %p821_p2 = pnand %p820_p12, %p814_p8 }
  0x3b   : > { %824 = shalt.err (!%p821_p2)
}
  0x3c   : > { %689 = dma.hbm_to_vmem [thread:$0]  (!%p1143_p0), %s1395_s1, 128, %s162_s6, [#allocation6]  }
  0x3d   : > { %p34_p1 = scmp.ge.s32.totalorder %s33_s8, 2  ;;  %s36_s12 = sadd.s32 1, %s1009_s21 }
  0x3e   : > { %s45_s30 = sadd.s32 1, %s993_s17  ;;  %p52_p2 = scmp.ne.s32.totalorder %s993_s17, %s989_s16 }
  0x3f   : > { %s1432_s8 = smov (%p34_p1, %s33_s8), 0  ;;  %s1434_s12 = smov (!%p34_p1, %s36_s12), %s1009_s21 }
  0x40   : > { %s41_s7 = ssub.s32 %s1005_s20, %s1432_s8  ;;  %p53_p4 = scmp.eq.s32.totalorder %s1013_s22, 0 }
  0x41   : > { %p38_p6 = scmp.ge.s32.totalorder %s1434_s12, 2  ;;  %p1396_p8 = scmp.ne.s32.totalorder %s1385_s26, 0 }
  0x42   : > { %p1180_p12 = por %p53_p4, %p52_p2  ;;  %s634_s23 = sshll.u32 %s1009_s21, 1 }
  0x43   : > { %p1176_p10 = por %p1396_p8, %p52_p2  ;;  %s1436_s12 = smov (%p38_p6, %s1434_s12), 0 }
  0x44   : > { %s118_s24 = sadd.s32 %s1005_s20, %s634_s23  ;;  %s124_s5 = sadd.s32 1, %s981_s14 }
  0x45   : > { %s1397_s11 = scalar_select %p1176_p10, 1, 0 }
  0x46   : > { %s40_s9 = ssub.s32 %s1009_s21, %s1436_s12  ;;  %s635_s26 = sshll.u32 %s1436_s12, 1 }
  0x47   : > { %1398 = sst [smem:[#allocation21_spill]] %s1397_s11  ;;  %s42_s10 = sor.u32 %s41_s7, %s40_s9 }
  0x48   : > { %s120_s1 = sadd.s32 %s635_s26, %s1432_s8  ;;  %p43_p0 = scmp.eq.s32.totalorder %s42_s10, 0 }
  0x49   : > { %s121_s28 = ssub.s32 %s118_s24, %s120_s1  ;;  %p702_p5 = scmp.lt.s32.totalorder %s1013_s22, 4 }
  0x4a   : > { %p122_p3 = scmp.eq.s32.totalorder %s121_s28, 0  ;;  %s172_s29 = sand.u32 1, %s993_s17  }
  0x4b   : > { %s1195_s15 = scalar_select %p43_p0, %s993_s17, %s45_s30  }
  0x4c   : > { %s1198_s3 = scalar_select %p122_p3, %s981_s14, %s124_s5  }
  0x4d   : > { %s641_s13 = sshll.u32 %s118_s24, 6  ;;  %s639_s2 = sshll.u32 %s172_s29, 2 }
  0x4e   : > { %s1204_s23 = scalar_lea.hbm %s1356_s0, %s641_s13  ;;  %s176_s7 = scalar_lea.vmem [#allocation2], %s639_s2 }
  0x4f   : > { %s185_s1 = sshll.u32 %s176_s7, 4  ;;  %p1208_p7 = pnand %p702_p5, %p1180_p12  ;;  %s1212_s1 = int_to_ptr.vmem [resolvable:$true] %s185_s1 }
  0x50   : > { %s173_s30 = scalar_lea.sflag [#allocation3], %s172_s29  ;;  %s825_s24 = scalar_lea.hbm %s1204_s23, 64 }
  0x51   : > { %p826_p9 = scmp.ne.s32.totalorder %s1204_s23, %s825_s24  ;;  %p827_p11 = pneg %p1208_p7 }
  0x52   : > { %s830_s18 = scalar_lea.hbm %s1356_s0, 256  ;;  %p831_p2 = scmp.lt.u32.totalorder %s1204_s23, %s1356_s0 }
  0x53   : > { %p828_p13 = pnand %p827_p11, %p826_p9  ;;  %p832_p4 = scmp.lt.u32.totalorder %s830_s18, %s825_s24 }
  0x54   : > { %p834_p8 = scmp.lt.u32.totalorder %s825_s24, %s1204_s23 }
  0x55   : > { %p829_p1 = pneg %p828_p13  ;;  %p833_p6 = por %p832_p4, %p831_p2 }
  0x57   : > { %p835_p12 = por %p834_p8, %p833_p6 }
  0x59   : > { %p836_p0 = pnand %p835_p12, %p829_p1 }
  0x5b   : > { %839 = shalt.err (!%p836_p0)
}
  0x5c   : > { %s840_s29 = scalar_lea.vmem %s1212_s1, 64  ;;  %s1016_s5 = smov [#allocation2]  }
  0x5d   : > { %p841_p3 = scmp.ne.s32.totalorder %s1212_s1, %s840_s29  ;;  %s845_s9 = sshll.u32 %s1016_s5, 4  ;;  %s846_s9 = int_to_ptr.vmem [resolvable:$false] %s845_s9 }
  0x5e   : > { %s847_s26 = scalar_lea.vmem %s846_s9, 128  ;;  %p848_p13 = scmp.lt.s32.totalorder %s1212_s1, %s846_s9 }
  0x5f   : > { %p843_p5 = pnand %p841_p3, %p827_p11  ;;  %p849_p2 = scmp.lt.s32.totalorder %s847_s26, %s840_s29 }
  0x61   : > { %p844_p9 = pneg %p843_p5  ;;  %p850_p4 = por %p849_p2, %p848_p13 }
  0x63   : > { %p851_p6 = pnand %p850_p4, %p844_p9 }
  0x65   : > { %854 = shalt.err (!%p851_p6)
}
  0x66   : > { %693 = dma.hbm_to_vmem [thread:$0]  (!%p1208_p7), %s1204_s23, 64, %s1212_s1, %s173_s30  }
  0x67   : > { %p1401_p1 = scmp.ne.s32.totalorder %s1393_s4, 0 }
  0x68   : > { %s1242_s10 = sand.u32 (!%p1401_p1), 1, %s989_s16   ;;  %p1402_p11 = scmp.ne.s32.totalorder (!%p1401_p1), %s1386_s27, 0 }
  0x69   : > { %194 = sbr.rel (%p1401_p1) target bundleno = 927 (0x39f), region = 28  ;;  %s643_s7 = sshll.u32 (!%p1401_p1), %s1242_s10, 2 }
  0x6a   : > { %s197_s24 = scalar_lea.sflag (!%p1401_p1), [#allocation3], %s1242_s10  ;;  %s200_s2 = scalar_lea.vmem (!%p1401_p1), [#allocation2], %s643_s7 }
  0x70   : > { %956 = dma.done.wait (%p1402_p11), %s197_s24, 64  }
  0x71   : > { %958 = vsyncadd (%p1402_p11), %s197_s24, 4294967232  ;;  %p1403_p7 = scmp.ne.s32.totalorder %s1384_s25, 0 }
  0x73   : > { %960 = dma.done.wait (%p1403_p7), [#allocation6], 128  }
  0x74   : > { %962 = vsyncadd (%p1403_p7), [#allocation6], 4294967168  ;;  %v1017_v0 = vmov 0.0   ;;  %vm1018_vm0 = vmmov 0   ;;  %v240_v1 = vld [vmem:[#allocation5] sm:$0x1f]  ;;  %v357_v11 = vlaneseq }
  0x75   : > { %664 = vmatprep.subr.mxu0 %v1017_v0  ;;  %666 = vmatprep.mubr.msk.f32.mxu0 %vm1018_vm0, %v1017_v0  ;;  %v234_v2 = vld [vmem:[%s200_s2] sm:$0xf]  ;;  %vm238_vm1 = vcmask 1040384   ;;  %vm277_vm2 = vcmask 1044480   ;;  %vm273_vm3 = vcmask 39936   ;;  %vm376_vm9 = vcmask 64512  }
  0x76   : > { %669 = vmatprep.subr.mxu1 %v1017_v0  ;;  %671 = vmatprep.mubr.msk.f32.mxu1 %vm1018_vm0, %v1017_v0  ;;  %v236_v3 = vrot.slane %v234_v2, 7  ;;  %v358_v14 = vshrl.u32 %v357_v11, 7  ;;  %v372_v24 = vld [vmem:[#allocation5 + $0x1] sm:$0xf]  ;;  %s1404_s25 = sld [smem:[#allocation17_spill]]  ;;  %v1019_v25 = vmov 1.0  }
  0x77   : > { %241 = vxpose.xlu0.b32.start.end [1/1] (short) (narrow) %v240_v1, 8  ;;  %s224_s27 = scalar_lea.vmem [#allocation7], %s643_s7  ;;  %vm454_vm11 = vcmask 1043456   ;;  %s654_s23 = sshll.u32 %s1001_s19, 1 }
  0x78   : > { %v239_v4 = vsel %vm238_vm1, 1.0, %v236_v3  ;;  %s1406_s18 = sld [smem:[#allocation23_spill]]  ;;  %s488_s29 = sshll.u32 %s224_s27, 4  ;;  %s489_s29 = int_to_ptr.vmem [resolvable:$true] %s488_s29 }
  0x79   : > { %665 = vmatpush3.msk.msra.mxu0 %vm277_vm2, %v239_v4  ;;  %s468_s5 = scalar_lea.sflag [#allocation4], %s1242_s10  ;;  %s855_s9 = scalar_lea.vmem %s489_s29, 64 }
  0x7a   : > { %p856_p8 = scmp.ne.s32.totalorder %s489_s29, %s855_s9  ;;  %s1020_s26 = smov [#allocation7]  }
  0x7b   : > { %s859_s7 = sshll.u32 %s1020_s26, 4  ;;  %s860_s7 = int_to_ptr.vmem [resolvable:$false] %s859_s7 }
  0x7c   : > { %s1260_s1 = sadd.s32 %s1404_s25, %s654_s23  ;;  %p857_p12 = pnand %p856_p8, %p1176_p10 }
  0x7d   : > { %s655_s28 = sshll.u32 %s1260_s1, 6  ;;  %s861_s19 = scalar_lea.vmem %s860_s7, 128 }
  0x7e   : > { %s1407_s11 = smov %s1406_s18  ;;  %s1266_s6 = scalar_lea.hbm %s1406_s18, %s655_s28 }
  0x7f   : > { %p858_p0 = pneg %p857_p12  ;;  %p862_p3 = scmp.lt.s32.totalorder %s489_s29, %s860_s7 }
  0x80   : > { %p863_p5 = scmp.lt.s32.totalorder %s861_s19, %s855_s9 }
  0x82   : > { %p864_p9 = por %p863_p5, %p862_p3 }
  0x84   : > { %p865_p13 = pnand %p864_p9, %p858_p0 }
  0xf7   : > { %v257_v5 = vpop.trf.xlu0 }
  0xf8   : > { %667 = vmatmul.mubr.msk.f32.vlgmr.msra.gmra.mrb[0].mxu0 %vm273_vm3, %v257_v5 }
 0x1cb   : > { %v347_v6 = vpop.f32.mrb[0].mxu0 }
 0x1cc   : > { %v351_v7 = vrot.slane %v347_v6, 4  ;;  %v668_v8 = vpop.f32.mrb[1].mxu0 }
 0x1ce   : > { %v352_v9 = vmin.f32 %v347_v6, %v351_v7 }
 0x1d0   : > { %v353_v10 = vrot.slane %v352_v9, 2 }
 0x1d2   : > { %v354_v12 = vmin.f32 %v352_v9, %v353_v10 }
 0x1d4   : > { %v355_v13 = vrot.slane %v354_v12, 1 }
 0x1d6   : > { %v356_v15 = vmin.f32 %v354_v12, %v355_v13 }
 0x1d8   : > { %vm359_vm4 = vcmp.le.f32.partialorder %v347_v6, %v356_v15  ;;  %vm370_vm8 = vcmp.lt.f32.partialorder %v356_v15, inf }
 0x1d9   : > { %v360_v16 = vsel %vm359_vm4, %v358_v14, 8 }
 0x1da   : > { %v361_v17 = vrot.slane %v360_v16, 4 }
 0x1dc   : > { %vm362_vm5 = vcmp.lt.s32.totalorder %v360_v16, %v361_v17 }
 0x1dd   : > { %v363_v18 = vsel %vm362_vm5, %v360_v16, %v361_v17 }
 0x1de   : > { %v364_v19 = vrot.slane %v363_v18, 2 }
 0x1e0   : > { %vm365_vm6 = vcmp.lt.s32.totalorder %v363_v18, %v364_v19 }
 0x1e1   : > { %v366_v20 = vsel %vm365_vm6, %v363_v18, %v364_v19 }
 0x1e2   : > { %v367_v21 = vrot.slane %v366_v20, 1 }
 0x1e4   : > { %vm368_vm7 = vcmp.lt.s32.totalorder %v366_v20, %v367_v21 }
 0x1e5   : > { %v369_v22 = vsel %vm368_vm7, %v366_v20, %v367_v21 }
 0x1e6   : > { %v371_v23 = vsel %vm370_vm8, %v369_v22, 0 }
 0x1e7   : > { %vm373_vm10 = vcmp.eq.s32.totalorder %v358_v14, %v371_v23 }
 0x1e8   : > { %670 = vmatpush3.msk.msra.mxu1 %vm373_vm10, %v1019_v25 }
 0x1e9   : > { %672 = vmatmul.mubr.msk.f32.vlgmr.msra.gmra.mrb[0].mxu1 %vm376_vm9, %v372_v24 }
 0x2bc   : > { %v446_v26 = vpop.f32.mrb[0].mxu1 }
 0x2bd   : > { %v450_v27 = vmul.f32 -0.5, %v446_v26  ;;  %v673_v28 = vpop.f32.mrb[1].mxu1 }
 0x2bf   : > { %451 = vst [vmem:[%s224_s27] sm:$0xf] %v450_v27  ;;  %v452_v29 = vsub.f32 %v450_v27, %v234_v2 }
 0x2c1   : > { %v453_v30 = vmul.f32 %v452_v29, %v452_v29 }
 0x2c3   : > { %v455_v31 = vsel %vm454_vm11, %v453_v30, 0.0 }
 0x2c4   : > { %456 = vadd.xlane.f32.xlu0 %v455_v31 }
 0x2c5   : > { %868 = shalt.err (!%p865_p13)
}
 0x2c6   : > { %s869_s10 = scalar_lea.hbm %s1266_s6, 64  ;;  %s873_s25 = scalar_lea.hbm %s1407_s11, 256 }
 0x2c7   : > { %p870_p2 = scmp.ne.s32.totalorder %s1266_s6, %s869_s10  ;;  %p874_p1 = scmp.lt.u32.totalorder %s1266_s6, %s1407_s11 }
 0x2c8   : > { %p875_p11 = scmp.lt.u32.totalorder %s873_s25, %s869_s10  ;;  %p877_p8 = scmp.lt.u32.totalorder %s869_s10, %s1266_s6 }
 0x2c9   : > { %p871_p4 = pnand %p870_p2, %p1176_p10 }
 0x2ca   : > { %p876_p7 = por %p875_p11, %p874_p1 }
 0x2cb   : > { %p872_p6 = pneg %p871_p4 }
 0x2cc   : > { %p878_p12 = por %p877_p8, %p876_p7 }
 0x2ce   : > { %p879_p0 = pnand %p878_p12, %p872_p6 }
 0x2d0   : > { %882 = shalt.err (!%p879_p0)
}
 0x2d1   : > { %s1408_s28 = sld [smem:[#allocation15_spill]]  ;;  %s1409_s30 = sld [smem:[#allocation19_spill]] }
 0x2d2   : > { %682 = dma.vmem_to_hbm [thread:$0]  (%p1176_p10), %s489_s29, 64, %s1266_s6, %s468_s5  }
 0x2d3   : > { %s657_s7 = sshll.u32 %s1260_s1, 7  ;;  %s1410_s5 = sld [smem:[#allocation24_spill]] }
 0x2d4   : > { %s1021_s1 = smov [#allocation8]  }
 0x2d5   : > { %s887_s2 = sshll.u32 %s1021_s1, 4  ;;  %s888_s2 = int_to_ptr.vmem [resolvable:$false] %s887_s2 }
 0x2d6   : > { %s889_s25 = scalar_lea.vmem %s888_s2, 256 }
 0x2d7   : > { %s229_s13 = sand.u32 1, %s1408_s28   ;;  %p1411_p3 = scmp.ne.s32.totalorder %s1409_s30, 0 }
 0x2d8   : > { %s646_s18 = sshll.u32 %s229_s13, 3  ;;  %s473_s10 = scalar_lea.sflag [#allocation9], %s229_s13 }
 0x2d9   : > { %s231_s9 = scalar_lea.vmem [#allocation8], %s646_s18  ;;  %s1293_s19 = scalar_lea.hbm %s1410_s5, %s657_s7 }
 0x2da   : > { %s503_s26 = sshll.u32 %s231_s9, 4  ;;  %s1288_s26 = int_to_ptr.vmem [resolvable:$true] %s503_s26 }
 0x2db   : > { %s883_s24 = scalar_lea.vmem %s1288_s26, 128  ;;  %p890_p13 = scmp.lt.s32.totalorder %s1288_s26, %s888_s2 }
 0x2dc   : > { %p884_p10 = scmp.ne.s32.totalorder %s1288_s26, %s883_s24  ;;  %p891_p2 = scmp.lt.s32.totalorder %s889_s25, %s883_s24 }
 0x2de   : > { %p885_p5 = pnand %p884_p10, %p1411_p3  ;;  %p892_p4 = por %p891_p2, %p890_p13 }
 0x2e0   : > { %p886_p9 = pneg %p885_p5 }
 0x2e2   : > { %p893_p6 = pnand %p892_p4, %p886_p9 }
 0x351   : > { %v457_v32 = vpop.xlane.xlu0 %456 }
 0x352   : > { %v458_v33 = vrot.slane %v457_v32, 4 }
 0x354   : > { %v459_v34 = vadd.f32 %v458_v33, %v457_v32 }
 0x356   : > { %v460_v35 = vrot.slane %v459_v34, 2 }
 0x358   : > { %v461_v36 = vadd.f32 %v460_v35, %v459_v34 }
 0x35a   : > { %v462_v37 = vrot.slane %v461_v36, 1 }
 0x35c   : > { %v463_v38 = vadd.f32 %v462_v37, %v461_v36 }
 0x35e   : > { %674 = vpush %v463_v38 }
 0x38f   : > { %s675_s4 = spop %674 }
 0x390   : > { %v465_v39 = vstv %s675_s4 }
 0x391   : > { %466 = vst [vmem:[%s231_s9] sm:$0xff] %v465_v39 }
 0x392   : > { %896 = shalt.err (!%p893_p6)
}
 0x393   : > { %s897_s27 = scalar_lea.hbm %s1293_s19, 128  ;;  %s901_s13 = scalar_lea.hbm %s1410_s5, 512 }
 0x394   : > { %p898_p1 = scmp.ne.s32.totalorder %s1293_s19, %s897_s27  ;;  %p902_p8 = scmp.lt.u32.totalorder %s1293_s19, %s1410_s5 }
 0x395   : > { %p903_p12 = scmp.lt.u32.totalorder %s901_s13, %s897_s27  ;;  %p905_p10 = scmp.lt.u32.totalorder %s897_s27, %s1293_s19 }
 0x396   : > { %p899_p11 = pnand %p898_p1, %p1411_p3 }
 0x397   : > { %p904_p0 = por %p903_p12, %p902_p8 }
 0x398   : > { %p900_p7 = pneg %p899_p11 }
 0x399   : > { %p906_p5 = por %p905_p10, %p904_p0 }
 0x39b   : > { %p907_p9 = pnand %p906_p5, %p900_p7 }
 0x39d   : > { %910 = shalt.err (!%p907_p9)
}
 0x39e   : > { %683 = dma.vmem_to_hbm [thread:$0]  (%p1411_p3), %s1288_s26, 128, %s1293_s19, %s473_s10  }
 0x39f PF: > { %s1412_s7 = sld [smem:[#allocation16_spill]]  ;;  %s1413_s4 = sld [smem:[#allocation18_spill]] }
 0x3a0   : > { %p704_p13 = scmp.ge.s32.totalorder %s1013_s22, 2 }
 0x3a5   : > { %s515_s6 = sand.u32 1, %s1412_s7   ;;  %p1414_p2 = scmp.ne.s32.totalorder %s1413_s4, 0 }
 0x3a6   : > { %s516_s29 = scalar_lea.sflag [#allocation4], %s515_s6 }
 0x3a7   : > { %p695_p4 = pnand %p704_p13, %p1414_p2 }
 0x3a9   : > { %964 = dma.done.wait (!%p695_p4), %s516_s29, 64  }
 0x3aa   : > { %966 = vsyncadd (!%p695_p4), %s516_s29, 4294967232  ;;  %s1415_s24 = sld [smem:[#allocation14_spill]]  ;;  %s1416_s1 = sld [smem:[#allocation20_spill]] }
 0x3b0   : > { %s524_s2 = sand.u32 1, %s1415_s24   ;;  %p1417_p6 = scmp.ne.s32.totalorder %s1416_s1, 0 }
 0x3b1   : > { %s525_s30 = scalar_lea.sflag [#allocation9], %s524_s2 }
 0x3b2   : > { %p698_p1 = pnand %p704_p13, %p1417_p6 }
 0x3b4   : > { %968 = dma.done.wait (!%p698_p1), %s525_s30, 128  }
 0x3b5   : > { %970 = vsyncadd (!%p698_p1), %s525_s30, 4294967168  ;;  %s24_s22 = sadd.s32 1, %s1013_s22   ;;  %s1418_s26 = sld [smem:[#allocation15_spill]] }
 0x3b6   : > { %p21_p3 = scmp.ge.s32.totalorder %s24_s22, 6   ;;  %s1419_s19 = smov %s1195_s15 }
 0x3b7   : > { %s1420_s10 = smov %s1436_s12  ;;  %s1422_s13 = smov %s981_s14 }
 0x3b8   : > { %s1423_s14 = smov %s1198_s3  ;;  %s1424_s15 = smov %s989_s16 }
 0x3b9   : > { %s1425_s16 = smov %s993_s17  ;;  %s1426_s17 = smov %s1419_s19 }
 0x3ba   : > { %s1427_s18 = smov %s1005_s20  ;;  %s1428_s19 = smov %s1009_s21 }
 0x3bb   : > { %s1421_s12 = smov %s1418_s26  ;;  %s1429_s20 = smov %s1432_s8 }
 0x3bc   : > { %s1430_s21 = smov %s1420_s10  ;;  %23 = sbr.rel (!%p21_p3) target bundleno = 16 (0x10), region = 94 }
 0x3c3   :  { %530 = vsyncpa [#allocation3], 1 }
 0x3c4   :  { %532 = vsyncpa [#allocation3 + $0x1], 1 }
 0x3c5   :  { %533 = vsyncpa [#allocation6], 1 }
 0x3c6   :  { %534 = vsyncpa [#allocation4], 1 }
 0x3c7   :  { %536 = vsyncpa [#allocation4 + $0x1], 1 }
 0x3c8   :  { %537 = vsyncpa [#allocation9], 1 }
 0x3c9   :  { %539 = vsyncpa [#allocation9 + $0x1], 1 }

</bundles_post_ra>
